<compile_context>
chip_gen: v5e
topology: v5e:2x2
jax: 0.10.0
libtpu: 0.0.40
codegen_flags: <defaults>
</compile_context>

<pallas_src>
import math
import functools

import jax
import jax.numpy as jnp
from jax import lax
from jax.experimental import pallas as pl
from jax.experimental.pallas import tpu as pltpu

D_MODEL = 128
NUM_HEADS = 4
D_K = D_MODEL // NUM_HEADS


def _tensorcores_per_chip() -> int:
    """Best-effort TensorCores-per-chip query; defaults to 1 (v5e/v6e) if unknown."""
    try:
        info = pltpu.get_tpu_info()
        for name in ("num_cores", "cores_per_chip", "num_tensorcores",
                     "tensorcores_per_chip"):
            val = getattr(info, name, None)
            if isinstance(val, int) and val > 0:
                return val
    except Exception:
        pass
    try:
        kind = str(getattr(jax.devices()[0], "device_kind", "") or "")
        if "7" in kind:      # v7x: 2 TensorCores per chip
            return 2
    except Exception:
        pass
    return 1


# ----------------------------- Fused MHA kernel --------------------------------
def mha_fused_kernel(qkv_ref, wqkv_ref, bqkv_ref, wo_ref, bo_ref, o_ref, *,
                     seq_len, batches_per_block):
    # qkv_ref: (3, rows, D) packed activations for this row block (rows = bpb * S).
    # Input projections on the MXU over ALL rows of the block at once.
    # Weights pre-transposed to (D_in, D_out); 1/sqrt(d_k) folded into W_q / b_q.
    # NOTE: in the self-attention case (q is k is v) these three MXU passes can be
    # fused into a single (rows, D) @ (D, 3D) matmul; kept general here (q != k != v).
    Q = jnp.dot(qkv_ref[0], wqkv_ref[0],
                preferred_element_type=jnp.float32) + bqkv_ref[0:1, :]
    K = jnp.dot(qkv_ref[1], wqkv_ref[1],
                preferred_element_type=jnp.float32) + bqkv_ref[1:2, :]
    V = jnp.dot(qkv_ref[2], wqkv_ref[2],
                preferred_element_type=jnp.float32) + bqkv_ref[2:3, :]

    bo = bo_ref[...]                                               # (1, D)

    # Static loops: attention never crosses batch boundaries; heads are 32-lane bands.
    for b in range(batches_per_block):
        r0, r1 = b * seq_len, (b + 1) * seq_len
        out_b = None
        for h in range(NUM_HEADS):
            band = slice(h * D_K, (h + 1) * D_K)
            qh = Q[r0:r1, band]                                    # (S, d_k)
            kh = K[r0:r1, band]
            vh = V[r0:r1, band]
            # q @ k^T without materializing a transpose: contract on the d_k axis.
            scores = lax.dot_general(
                qh, kh, (((1,), (1,)), ((), ())),
                preferred_element_type=jnp.float32)                # (S, S), scale pre-folded
            m = jnp.max(scores, axis=-1, keepdims=True)
            p = jnp.exp(scores - m)
            denom = jnp.sum(p, axis=-1, keepdims=True)
            attn = p * pl.reciprocal(denom, approx=False)          # exact: softmax parity
            ov = jnp.dot(attn, vh, preferred_element_type=jnp.float32)        # (S, d_k)
            # Head output goes straight through its band of W_o: no 128-lane concat,
            # each partial product is already a lane-dense (S, 128) accumulation.
            contrib = jnp.dot(ov, wo_ref[band, :],
                              preferred_element_type=jnp.float32)  # (S, D)
            out_b = contrib if out_b is None else out_b + contrib
        o_ref[r0:r1, :] = out_b + bo                               # lane-dense (S, 128) store


def multi_head_attention(packed, query, key, value):
    """query/key/value: (B, S, D_MODEL) float32 -> (B, S, D_MODEL) float32."""
    B, S, D = query.shape
    assert D == D_MODEL
    rows = B * S

    # 2-wide "parallel" row grid on v7x (2 TCs/chip); single grid step on 1-TC chips
    # (v5e/v6e), where extra grid steps are pure per-step pipeline overhead.
    num_blocks = min(B, max(1, _tensorcores_per_chip()))
    while B % num_blocks:
        num_blocks -= 1
    bpb = B // num_blocks
    rows_per_block = bpb * S

    # One packed activation operand -> 1 DMA per grid step instead of 3 tiny ones.
    qkv = jnp.stack([query.reshape(rows, D),
                     key.reshape(rows, D),
                     value.reshape(rows, D)], axis=0)              # (3, B*S, D)

    kernel = functools.partial(mha_fused_kernel, seq_len=S, batches_per_block=bpb)

    # Weight/bias blocks are constant across the (tiny) grid; at larger D they could
    # additionally be single-buffered via pipeline_mode=pl.Buffered(1) to save VMEM.
    out = pl.pallas_call(
        kernel,
        out_shape=jax.ShapeDtypeStruct((rows, D), jnp.float32),
        grid_spec=pltpu.PrefetchScalarGridSpec(
            num_scalar_prefetch=0,
            grid=(num_blocks,),
            in_specs=[
                pl.BlockSpec((3, rows_per_block, D), lambda i: (0, i, 0)),  # packed q/k/v
                pl.BlockSpec((3, D, D), lambda i: (0, 0, 0)),   # W_q/W_k/W_v (pre-T, scaled)
                pl.BlockSpec((3, D), lambda i: (0, 0)),         # b_q/b_k/b_v (b_q scaled)
                pl.BlockSpec((D, D), lambda i: (0, 0)),         # W_o (pre-T)
                pl.BlockSpec((1, D), lambda i: (0, 0)),         # b_o
            ],
            out_specs=pl.BlockSpec((rows_per_block, D), lambda i: (i, 0)),
        ),
        compiler_params=pltpu.CompilerParams(
            dimension_semantics=("parallel",),                  # megacore sharding on v7x
        ),
    )(qkv, packed["wqkv_t"], packed["bqkv"], packed["wo_t"], packed["bo"])
    return out.reshape(B, S, D)


def pack_params(params):
    """One-time repack outside the forward path:
       * transpose torch-layout (D_out, D_in) weights to (D_in, D_out),
       * fold the 1/sqrt(d_k) attention scale into W_q / b_q,
       * stack Q/K/V weights / biases into single slabs."""
    scale = 1.0 / math.sqrt(D_K)
    wqkv_t = jnp.stack([(params["wq"] * scale).T,
                        params["wk"].T,
                        params["wv"].T], axis=0)
    bqkv = jnp.stack([params["bq"] * scale, params["bk"], params["bv"]], axis=0)
    return {
        "wqkv_t": wqkv_t,                        # (3, D, D)  [D_in, D_out]
        "bqkv": bqkv,                            # (3, D)
        "wo_t": params["wo"].T,                  # (D, D)     [D_in, D_out]
        "bo": params["bo"].reshape(1, D_MODEL),  # (1, D)
    }


# ------------------------------ Reference (plain JAX) ---------------------------
def reference_mha(params, query, key, value):
    B, S, D = query.shape

    def lin(x, w, b):
        return x @ w.T + b

    def split(x):
        return x.reshape(B, S, NUM_HEADS, D_K).transpose(0, 2, 1, 3)

    Q = split(lin(query, params["wq"], params["bq"]))
    K = split(lin(key, params["wk"], params["bk"]))
    V = split(lin(value, params["wv"], params["bv"]))
    scores = jnp.einsum("bhqd,bhkd->bhqk", Q, K) / math.sqrt(D_K)
    attn = jax.nn.softmax(scores, axis=-1)
    out = jnp.einsum("bhqk,bhkd->bhqd", attn, V)
    out = out.transpose(0, 2, 1, 3).reshape(B, S, D)
    return lin(out, params["wo"], params["bo"])


if __name__ == "__main__":
    B, S = 2, 8
    root = jax.random.PRNGKey(0)
    keys = jax.random.split(root, 12)

    def winit(k):
        bound = 1.0 / math.sqrt(D_MODEL)
        return jax.random.uniform(k, (D_MODEL, D_MODEL), jnp.float32, -bound, bound)

    def binit(k):
        bound = 1.0 / math.sqrt(D_MODEL)
        return jax.random.uniform(k, (D_MODEL,), jnp.float32, -bound, bound)

    params = {
        "wq": winit(keys[0]), "bq": binit(keys[1]),
        "wk": winit(keys[2]), "bk": binit(keys[3]),
        "wv": winit(keys[4]), "bv": binit(keys[5]),
        "wo": winit(keys[6]), "bo": binit(keys[7]),
    }

    query = jax.random.normal(keys[8], (B, S, D_MODEL), jnp.float32)
    key_in = jax.random.normal(keys[9], (B, S, D_MODEL), jnp.float32)
    value = jax.random.normal(keys[10], (B, S, D_MODEL), jnp.float32)

    packed = pack_params(params)  # one-time repack; not part of the forward path

    out = multi_head_attention(packed, query, key_in, value)
    out = jax.block_until_ready(out)

    ref = reference_mha(params, query, key_in, value)
    assert out.shape == (B, S, D_MODEL)
    assert jnp.allclose(out, ref, atol=2e-3, rtol=2e-3), "mismatch vs reference"

    print("KERNEL_OK")
</pallas_src>

<mosaic_0001>
module attributes {stable_mosaic.version = 11 : i64} {
  func.func @mha_fused_kernel(%arg0: i32, %arg1: memref<3x16x128xf32, #tpu.memory_space<vmem>>, %arg2: memref<3x128x128xf32, #tpu.memory_space<vmem>>, %arg3: memref<3x128xf32, #tpu.memory_space<vmem>>, %arg4: memref<128x128xf32, #tpu.memory_space<vmem>>, %arg5: memref<1x128xf32, #tpu.memory_space<vmem>>, %arg6: memref<16x128xf32, #tpu.memory_space<vmem>>) attributes {dimension_semantics = [#tpu.dimension_semantics<parallel>], iteration_bounds = array<i64: 1>, scalar_prefetch = 0 : i64, scratch_operands = 0 : i64, tpu.core_type = #tpu.core_type<tc>, window_params = [{transform_indices = @transform_0, window_bounds = array<i64: 3, 16, 128>}, {pipeline_mode = #tpu.pipeline_mode<synchronous>, transform_indices = @transform_1, window_bounds = array<i64: 3, 128, 128>}, {pipeline_mode = #tpu.pipeline_mode<synchronous>, transform_indices = @transform_2, window_bounds = array<i64: 3, 128>}, {pipeline_mode = #tpu.pipeline_mode<synchronous>, transform_indices = @transform_3, window_bounds = array<i64: 128, 128>}, {pipeline_mode = #tpu.pipeline_mode<synchronous>, transform_indices = @transform_4, window_bounds = array<i64: 1, 128>}, {transform_indices = @transform_5, window_bounds = array<i64: 16, 128>}]} {
    %c0 = arith.constant 0 : index
    %c0_0 = arith.constant 0 : index
    %c0_1 = arith.constant 0 : index
    %0 = vector.load %arg1[%c0, %c0_0, %c0_1] : memref<3x16x128xf32, #tpu.memory_space<vmem>>, vector<1x16x128xf32>
    %1 = vector.shape_cast %0 : vector<1x16x128xf32> to vector<16x128xf32>
    %c0_2 = arith.constant 0 : index
    %c0_3 = arith.constant 0 : index
    %c0_4 = arith.constant 0 : index
    %2 = vector.load %arg2[%c0_2, %c0_3, %c0_4] : memref<3x128x128xf32, #tpu.memory_space<vmem>>, vector<1x128x128xf32>
    %3 = vector.shape_cast %2 : vector<1x128x128xf32> to vector<128x128xf32>
    %cst = arith.constant dense<0.000000e+00> : vector<16x128xf32>
    %4 = tpu.matmul %1, %3, %cst {dimension_numbers = #tpu.dot_dimension_numbers<[1], [0], [0], [1], [0, 0, 1, 1], [], []>} : vector<16x128xf32>, vector<128x128xf32>, vector<16x128xf32> -> vector<16x128xf32>
    %c0_5 = arith.constant 0 : index
    %c0_6 = arith.constant 0 : index
    %5 = vector.load %arg3[%c0_5, %c0_6] : memref<3x128xf32, #tpu.memory_space<vmem>>, vector<1x128xf32>
    %6 = vector.broadcast %5 : vector<1x128xf32> to vector<16x128xf32>
    %7 = arith.addf %4, %6 : vector<16x128xf32>
    %c1 = arith.constant 1 : index
    %c0_7 = arith.constant 0 : index
    %c0_8 = arith.constant 0 : index
    %8 = vector.load %arg1[%c1, %c0_7, %c0_8] : memref<3x16x128xf32, #tpu.memory_space<vmem>>, vector<1x16x128xf32>
    %9 = vector.shape_cast %8 : vector<1x16x128xf32> to vector<16x128xf32>
    %c1_9 = arith.constant 1 : index
    %c0_10 = arith.constant 0 : index
    %c0_11 = arith.constant 0 : index
    %10 = vector.load %arg2[%c1_9, %c0_10, %c0_11] : memref<3x128x128xf32, #tpu.memory_space<vmem>>, vector<1x128x128xf32>
    %11 = vector.shape_cast %10 : vector<1x128x128xf32> to vector<128x128xf32>
    %cst_12 = arith.constant dense<0.000000e+00> : vector<16x128xf32>
    %12 = tpu.matmul %9, %11, %cst_12 {dimension_numbers = #tpu.dot_dimension_numbers<[1], [0], [0], [1], [0, 0, 1, 1], [], []>} : vector<16x128xf32>, vector<128x128xf32>, vector<16x128xf32> -> vector<16x128xf32>
    %c1_13 = arith.constant 1 : index
    %c0_14 = arith.constant 0 : index
    %13 = vector.load %arg3[%c1_13, %c0_14] : memref<3x128xf32, #tpu.memory_space<vmem>>, vector<1x128xf32>
    %14 = vector.broadcast %13 : vector<1x128xf32> to vector<16x128xf32>
    %15 = arith.addf %12, %14 : vector<16x128xf32>
    %c2 = arith.constant 2 : index
    %c0_15 = arith.constant 0 : index
    %c0_16 = arith.constant 0 : index
    %16 = vector.load %arg1[%c2, %c0_15, %c0_16] : memref<3x16x128xf32, #tpu.memory_space<vmem>>, vector<1x16x128xf32>
    %17 = vector.shape_cast %16 : vector<1x16x128xf32> to vector<16x128xf32>
    %c2_17 = arith.constant 2 : index
    %c0_18 = arith.constant 0 : index
    %c0_19 = arith.constant 0 : index
    %18 = vector.load %arg2[%c2_17, %c0_18, %c0_19] : memref<3x128x128xf32, #tpu.memory_space<vmem>>, vector<1x128x128xf32>
    %19 = vector.shape_cast %18 : vector<1x128x128xf32> to vector<128x128xf32>
    %cst_20 = arith.constant dense<0.000000e+00> : vector<16x128xf32>
    %20 = tpu.matmul %17, %19, %cst_20 {dimension_numbers = #tpu.dot_dimension_numbers<[1], [0], [0], [1], [0, 0, 1, 1], [], []>} : vector<16x128xf32>, vector<128x128xf32>, vector<16x128xf32> -> vector<16x128xf32>
    %c2_21 = arith.constant 2 : index
    %c0_22 = arith.constant 0 : index
    %21 = vector.load %arg3[%c2_21, %c0_22] : memref<3x128xf32, #tpu.memory_space<vmem>>, vector<1x128xf32>
    %22 = vector.broadcast %21 : vector<1x128xf32> to vector<16x128xf32>
    %23 = arith.addf %20, %22 : vector<16x128xf32>
    %c0_23 = arith.constant 0 : index
    %c0_24 = arith.constant 0 : index
    %24 = vector.load %arg5[%c0_23, %c0_24] : memref<1x128xf32, #tpu.memory_space<vmem>>, vector<1x128xf32>
    %25 = vector.extract_strided_slice %7 {offsets = [0, 0], sizes = [8, 32], strides = [1, 1]} : vector<16x128xf32> to vector<8x32xf32>
    %26 = vector.extract_strided_slice %15 {offsets = [0, 0], sizes = [8, 32], strides = [1, 1]} : vector<16x128xf32> to vector<8x32xf32>
    %27 = vector.extract_strided_slice %23 {offsets = [0, 0], sizes = [8, 32], strides = [1, 1]} : vector<16x128xf32> to vector<8x32xf32>
    %cst_25 = arith.constant dense<0.000000e+00> : vector<8x8xf32>
    %28 = tpu.matmul %25, %26, %cst_25 {dimension_numbers = #tpu.dot_dimension_numbers<[1], [1], [0], [0], [0, 0, 1, 0], [], []>} : vector<8x32xf32>, vector<8x32xf32>, vector<8x8xf32> -> vector<8x8xf32>
    %cst_26 = arith.constant dense<0xFF800000> : vector<8xf32>
    %29 = vector.multi_reduction <maximumf>, %28, %cst_26 [1] : vector<8x8xf32> to vector<8xf32>
    %30 = vector.shape_cast %29 : vector<8xf32> to vector<8x1xf32>
    %31 = vector.broadcast %30 : vector<8x1xf32> to vector<8x8xf32>
    %32 = arith.subf %28, %31 : vector<8x8xf32>
    %33 = math.exp %32 : vector<8x8xf32>
    %cst_27 = arith.constant dense<0.000000e+00> : vector<8xf32>
    %34 = vector.multi_reduction <add>, %33, %cst_27 [1] : vector<8x8xf32> to vector<8xf32>
    %35 = vector.shape_cast %34 : vector<8xf32> to vector<8x1xf32>
    %36 = tpu.reciprocal %35 : vector<8x1xf32> -> vector<8x1xf32>
    %37 = vector.broadcast %36 : vector<8x1xf32> to vector<8x8xf32>
    %38 = arith.mulf %33, %37 : vector<8x8xf32>
    %cst_28 = arith.constant dense<0.000000e+00> : vector<8x32xf32>
    %39 = tpu.matmul %38, %27, %cst_28 {dimension_numbers = #tpu.dot_dimension_numbers<[1], [0], [0], [1], [0, 0, 1, 1], [], []>} : vector<8x8xf32>, vector<8x32xf32>, vector<8x32xf32> -> vector<8x32xf32>
    %c0_29 = arith.constant 0 : index
    %c0_30 = arith.constant 0 : index
    %40 = vector.load %arg4[%c0_29, %c0_30] : memref<128x128xf32, #tpu.memory_space<vmem>>, vector<32x128xf32>
    %cst_31 = arith.constant dense<0.000000e+00> : vector<8x128xf32>
    %41 = tpu.matmul %39, %40, %cst_31 {dimension_numbers = #tpu.dot_dimension_numbers<[1], [0], [0], [1], [0, 0, 1, 1], [], []>} : vector<8x32xf32>, vector<32x128xf32>, vector<8x128xf32> -> vector<8x128xf32>
    %42 = vector.extract_strided_slice %7 {offsets = [0, 32], sizes = [8, 32], strides = [1, 1]} : vector<16x128xf32> to vector<8x32xf32>
    %43 = vector.extract_strided_slice %15 {offsets = [0, 32], sizes = [8, 32], strides = [1, 1]} : vector<16x128xf32> to vector<8x32xf32>
    %44 = vector.extract_strided_slice %23 {offsets = [0, 32], sizes = [8, 32], strides = [1, 1]} : vector<16x128xf32> to vector<8x32xf32>
    %cst_32 = arith.constant dense<0.000000e+00> : vector<8x8xf32>
    %45 = tpu.matmul %42, %43, %cst_32 {dimension_numbers = #tpu.dot_dimension_numbers<[1], [1], [0], [0], [0, 0, 1, 0], [], []>} : vector<8x32xf32>, vector<8x32xf32>, vector<8x8xf32> -> vector<8x8xf32>
    %cst_33 = arith.constant dense<0xFF800000> : vector<8xf32>
    %46 = vector.multi_reduction <maximumf>, %45, %cst_33 [1] : vector<8x8xf32> to vector<8xf32>
    %47 = vector.shape_cast %46 : vector<8xf32> to vector<8x1xf32>
    %48 = vector.broadcast %47 : vector<8x1xf32> to vector<8x8xf32>
    %49 = arith.subf %45, %48 : vector<8x8xf32>
    %50 = math.exp %49 : vector<8x8xf32>
    %cst_34 = arith.constant dense<0.000000e+00> : vector<8xf32>
    %51 = vector.multi_reduction <add>, %50, %cst_34 [1] : vector<8x8xf32> to vector<8xf32>
    %52 = vector.shape_cast %51 : vector<8xf32> to vector<8x1xf32>
    %53 = tpu.reciprocal %52 : vector<8x1xf32> -> vector<8x1xf32>
    %54 = vector.broadcast %53 : vector<8x1xf32> to vector<8x8xf32>
    %55 = arith.mulf %50, %54 : vector<8x8xf32>
    %cst_35 = arith.constant dense<0.000000e+00> : vector<8x32xf32>
    %56 = tpu.matmul %55, %44, %cst_35 {dimension_numbers = #tpu.dot_dimension_numbers<[1], [0], [0], [1], [0, 0, 1, 1], [], []>} : vector<8x8xf32>, vector<8x32xf32>, vector<8x32xf32> -> vector<8x32xf32>
    %c32 = arith.constant 32 : index
    %c0_36 = arith.constant 0 : index
    %57 = vector.load %arg4[%c32, %c0_36] : memref<128x128xf32, #tpu.memory_space<vmem>>, vector<32x128xf32>
    %cst_37 = arith.constant dense<0.000000e+00> : vector<8x128xf32>
    %58 = tpu.matmul %56, %57, %cst_37 {dimension_numbers = #tpu.dot_dimension_numbers<[1], [0], [0], [1], [0, 0, 1, 1], [], []>} : vector<8x32xf32>, vector<32x128xf32>, vector<8x128xf32> -> vector<8x128xf32>
    %59 = arith.addf %41, %58 : vector<8x128xf32>
    %60 = vector.extract_strided_slice %7 {offsets = [0, 64], sizes = [8, 32], strides = [1, 1]} : vector<16x128xf32> to vector<8x32xf32>
    %61 = vector.extract_strided_slice %15 {offsets = [0, 64], sizes = [8, 32], strides = [1, 1]} : vector<16x128xf32> to vector<8x32xf32>
    %62 = vector.extract_strided_slice %23 {offsets = [0, 64], sizes = [8, 32], strides = [1, 1]} : vector<16x128xf32> to vector<8x32xf32>
    %cst_38 = arith.constant dense<0.000000e+00> : vector<8x8xf32>
    %63 = tpu.matmul %60, %61, %cst_38 {dimension_numbers = #tpu.dot_dimension_numbers<[1], [1], [0], [0], [0, 0, 1, 0], [], []>} : vector<8x32xf32>, vector<8x32xf32>, vector<8x8xf32> -> vector<8x8xf32>
    %cst_39 = arith.constant dense<0xFF800000> : vector<8xf32>
    %64 = vector.multi_reduction <maximumf>, %63, %cst_39 [1] : vector<8x8xf32> to vector<8xf32>
    %65 = vector.shape_cast %64 : vector<8xf32> to vector<8x1xf32>
    %66 = vector.broadcast %65 : vector<8x1xf32> to vector<8x8xf32>
    %67 = arith.subf %63, %66 : vector<8x8xf32>
    %68 = math.exp %67 : vector<8x8xf32>
    %cst_40 = arith.constant dense<0.000000e+00> : vector<8xf32>
    %69 = vector.multi_reduction <add>, %68, %cst_40 [1] : vector<8x8xf32> to vector<8xf32>
    %70 = vector.shape_cast %69 : vector<8xf32> to vector<8x1xf32>
    %71 = tpu.reciprocal %70 : vector<8x1xf32> -> vector<8x1xf32>
    %72 = vector.broadcast %71 : vector<8x1xf32> to vector<8x8xf32>
    %73 = arith.mulf %68, %72 : vector<8x8xf32>
    %cst_41 = arith.constant dense<0.000000e+00> : vector<8x32xf32>
    %74 = tpu.matmul %73, %62, %cst_41 {dimension_numbers = #tpu.dot_dimension_numbers<[1], [0], [0], [1], [0, 0, 1, 1], [], []>} : vector<8x8xf32>, vector<8x32xf32>, vector<8x32xf32> -> vector<8x32xf32>
    %c64 = arith.constant 64 : index
    %c0_42 = arith.constant 0 : index
    %75 = vector.load %arg4[%c64, %c0_42] : memref<128x128xf32, #tpu.memory_space<vmem>>, vector<32x128xf32>
    %cst_43 = arith.constant dense<0.000000e+00> : vector<8x128xf32>
    %76 = tpu.matmul %74, %75, %cst_43 {dimension_numbers = #tpu.dot_dimension_numbers<[1], [0], [0], [1], [0, 0, 1, 1], [], []>} : vector<8x32xf32>, vector<32x128xf32>, vector<8x128xf32> -> vector<8x128xf32>
    %77 = arith.addf %59, %76 : vector<8x128xf32>
    %78 = vector.extract_strided_slice %7 {offsets = [0, 96], sizes = [8, 32], strides = [1, 1]} : vector<16x128xf32> to vector<8x32xf32>
    %79 = vector.extract_strided_slice %15 {offsets = [0, 96], sizes = [8, 32], strides = [1, 1]} : vector<16x128xf32> to vector<8x32xf32>
    %80 = vector.extract_strided_slice %23 {offsets = [0, 96], sizes = [8, 32], strides = [1, 1]} : vector<16x128xf32> to vector<8x32xf32>
    %cst_44 = arith.constant dense<0.000000e+00> : vector<8x8xf32>
    %81 = tpu.matmul %78, %79, %cst_44 {dimension_numbers = #tpu.dot_dimension_numbers<[1], [1], [0], [0], [0, 0, 1, 0], [], []>} : vector<8x32xf32>, vector<8x32xf32>, vector<8x8xf32> -> vector<8x8xf32>
    %cst_45 = arith.constant dense<0xFF800000> : vector<8xf32>
    %82 = vector.multi_reduction <maximumf>, %81, %cst_45 [1] : vector<8x8xf32> to vector<8xf32>
    %83 = vector.shape_cast %82 : vector<8xf32> to vector<8x1xf32>
    %84 = vector.broadcast %83 : vector<8x1xf32> to vector<8x8xf32>
    %85 = arith.subf %81, %84 : vector<8x8xf32>
    %86 = math.exp %85 : vector<8x8xf32>
    %cst_46 = arith.constant dense<0.000000e+00> : vector<8xf32>
    %87 = vector.multi_reduction <add>, %86, %cst_46 [1] : vector<8x8xf32> to vector<8xf32>
    %88 = vector.shape_cast %87 : vector<8xf32> to vector<8x1xf32>
    %89 = tpu.reciprocal %88 : vector<8x1xf32> -> vector<8x1xf32>
    %90 = vector.broadcast %89 : vector<8x1xf32> to vector<8x8xf32>
    %91 = arith.mulf %86, %90 : vector<8x8xf32>
    %cst_47 = arith.constant dense<0.000000e+00> : vector<8x32xf32>
    %92 = tpu.matmul %91, %80, %cst_47 {dimension_numbers = #tpu.dot_dimension_numbers<[1], [0], [0], [1], [0, 0, 1, 1], [], []>} : vector<8x8xf32>, vector<8x32xf32>, vector<8x32xf32> -> vector<8x32xf32>
    %c96 = arith.constant 96 : index
    %c0_48 = arith.constant 0 : index
    %93 = vector.load %arg4[%c96, %c0_48] : memref<128x128xf32, #tpu.memory_space<vmem>>, vector<32x128xf32>
    %cst_49 = arith.constant dense<0.000000e+00> : vector<8x128xf32>
    %94 = tpu.matmul %92, %93, %cst_49 {dimension_numbers = #tpu.dot_dimension_numbers<[1], [0], [0], [1], [0, 0, 1, 1], [], []>} : vector<8x32xf32>, vector<32x128xf32>, vector<8x128xf32> -> vector<8x128xf32>
    %95 = arith.addf %77, %94 : vector<8x128xf32>
    %96 = vector.broadcast %24 : vector<1x128xf32> to vector<8x128xf32>
    %97 = arith.addf %95, %96 : vector<8x128xf32>
    %c0_50 = arith.constant 0 : index
    %c0_51 = arith.constant 0 : index
    %98 = vector.load %arg6[%c0_50, %c0_51] : memref<16x128xf32, #tpu.memory_space<vmem>>, vector<8x128xf32>
    tpu.vector_store %arg6[%c0_50, %c0_51], %97 {strides = array<i32>} : memref<16x128xf32, #tpu.memory_space<vmem>>, vector<8x128xf32>,
    %99 = vector.extract_strided_slice %7 {offsets = [8, 0], sizes = [8, 32], strides = [1, 1]} : vector<16x128xf32> to vector<8x32xf32>
    %100 = vector.extract_strided_slice %15 {offsets = [8, 0], sizes = [8, 32], strides = [1, 1]} : vector<16x128xf32> to vector<8x32xf32>
    %101 = vector.extract_strided_slice %23 {offsets = [8, 0], sizes = [8, 32], strides = [1, 1]} : vector<16x128xf32> to vector<8x32xf32>
    %cst_52 = arith.constant dense<0.000000e+00> : vector<8x8xf32>
    %102 = tpu.matmul %99, %100, %cst_52 {dimension_numbers = #tpu.dot_dimension_numbers<[1], [1], [0], [0], [0, 0, 1, 0], [], []>} : vector<8x32xf32>, vector<8x32xf32>, vector<8x8xf32> -> vector<8x8xf32>
    %cst_53 = arith.constant dense<0xFF800000> : vector<8xf32>
    %103 = vector.multi_reduction <maximumf>, %102, %cst_53 [1] : vector<8x8xf32> to vector<8xf32>
    %104 = vector.shape_cast %103 : vector<8xf32> to vector<8x1xf32>
    %105 = vector.broadcast %104 : vector<8x1xf32> to vector<8x8xf32>
    %106 = arith.subf %102, %105 : vector<8x8xf32>
    %107 = math.exp %106 : vector<8x8xf32>
    %cst_54 = arith.constant dense<0.000000e+00> : vector<8xf32>
    %108 = vector.multi_reduction <add>, %107, %cst_54 [1] : vector<8x8xf32> to vector<8xf32>
    %109 = vector.shape_cast %108 : vector<8xf32> to vector<8x1xf32>
    %110 = tpu.reciprocal %109 : vector<8x1xf32> -> vector<8x1xf32>
    %111 = vector.broadcast %110 : vector<8x1xf32> to vector<8x8xf32>
    %112 = arith.mulf %107, %111 : vector<8x8xf32>
    %cst_55 = arith.constant dense<0.000000e+00> : vector<8x32xf32>
    %113 = tpu.matmul %112, %101, %cst_55 {dimension_numbers = #tpu.dot_dimension_numbers<[1], [0], [0], [1], [0, 0, 1, 1], [], []>} : vector<8x8xf32>, vector<8x32xf32>, vector<8x32xf32> -> vector<8x32xf32>
    %c0_56 = arith.constant 0 : index
    %c0_57 = arith.constant 0 : index
    %114 = vector.load %arg4[%c0_56, %c0_57] : memref<128x128xf32, #tpu.memory_space<vmem>>, vector<32x128xf32>
    %cst_58 = arith.constant dense<0.000000e+00> : vector<8x128xf32>
    %115 = tpu.matmul %113, %114, %cst_58 {dimension_numbers = #tpu.dot_dimension_numbers<[1], [0], [0], [1], [0, 0, 1, 1], [], []>} : vector<8x32xf32>, vector<32x128xf32>, vector<8x128xf32> -> vector<8x128xf32>
    %116 = vector.extract_strided_slice %7 {offsets = [8, 32], sizes = [8, 32], strides = [1, 1]} : vector<16x128xf32> to vector<8x32xf32>
    %117 = vector.extract_strided_slice %15 {offsets = [8, 32], sizes = [8, 32], strides = [1, 1]} : vector<16x128xf32> to vector<8x32xf32>
    %118 = vector.extract_strided_slice %23 {offsets = [8, 32], sizes = [8, 32], strides = [1, 1]} : vector<16x128xf32> to vector<8x32xf32>
    %cst_59 = arith.constant dense<0.000000e+00> : vector<8x8xf32>
    %119 = tpu.matmul %116, %117, %cst_59 {dimension_numbers = #tpu.dot_dimension_numbers<[1], [1], [0], [0], [0, 0, 1, 0], [], []>} : vector<8x32xf32>, vector<8x32xf32>, vector<8x8xf32> -> vector<8x8xf32>
    %cst_60 = arith.constant dense<0xFF800000> : vector<8xf32>
    %120 = vector.multi_reduction <maximumf>, %119, %cst_60 [1] : vector<8x8xf32> to vector<8xf32>
    %121 = vector.shape_cast %120 : vector<8xf32> to vector<8x1xf32>
    %122 = vector.broadcast %121 : vector<8x1xf32> to vector<8x8xf32>
    %123 = arith.subf %119, %122 : vector<8x8xf32>
    %124 = math.exp %123 : vector<8x8xf32>
    %cst_61 = arith.constant dense<0.000000e+00> : vector<8xf32>
    %125 = vector.multi_reduction <add>, %124, %cst_61 [1] : vector<8x8xf32> to vector<8xf32>
    %126 = vector.shape_cast %125 : vector<8xf32> to vector<8x1xf32>
    %127 = tpu.reciprocal %126 : vector<8x1xf32> -> vector<8x1xf32>
    %128 = vector.broadcast %127 : vector<8x1xf32> to vector<8x8xf32>
    %129 = arith.mulf %124, %128 : vector<8x8xf32>
    %cst_62 = arith.constant dense<0.000000e+00> : vector<8x32xf32>
    %130 = tpu.matmul %129, %118, %cst_62 {dimension_numbers = #tpu.dot_dimension_numbers<[1], [0], [0], [1], [0, 0, 1, 1], [], []>} : vector<8x8xf32>, vector<8x32xf32>, vector<8x32xf32> -> vector<8x32xf32>
    %c32_63 = arith.constant 32 : index
    %c0_64 = arith.constant 0 : index
    %131 = vector.load %arg4[%c32_63, %c0_64] : memref<128x128xf32, #tpu.memory_space<vmem>>, vector<32x128xf32>
    %cst_65 = arith.constant dense<0.000000e+00> : vector<8x128xf32>
    %132 = tpu.matmul %130, %131, %cst_65 {dimension_numbers = #tpu.dot_dimension_numbers<[1], [0], [0], [1], [0, 0, 1, 1], [], []>} : vector<8x32xf32>, vector<32x128xf32>, vector<8x128xf32> -> vector<8x128xf32>
    %133 = arith.addf %115, %132 : vector<8x128xf32>
    %134 = vector.extract_strided_slice %7 {offsets = [8, 64], sizes = [8, 32], strides = [1, 1]} : vector<16x128xf32> to vector<8x32xf32>
    %135 = vector.extract_strided_slice %15 {offsets = [8, 64], sizes = [8, 32], strides = [1, 1]} : vector<16x128xf32> to vector<8x32xf32>
    %136 = vector.extract_strided_slice %23 {offsets = [8, 64], sizes = [8, 32], strides = [1, 1]} : vector<16x128xf32> to vector<8x32xf32>
    %cst_66 = arith.constant dense<0.000000e+00> : vector<8x8xf32>
    %137 = tpu.matmul %134, %135, %cst_66 {dimension_numbers = #tpu.dot_dimension_numbers<[1], [1], [0], [0], [0, 0, 1, 0], [], []>} : vector<8x32xf32>, vector<8x32xf32>, vector<8x8xf32> -> vector<8x8xf32>
    %cst_67 = arith.constant dense<0xFF800000> : vector<8xf32>
    %138 = vector.multi_reduction <maximumf>, %137, %cst_67 [1] : vector<8x8xf32> to vector<8xf32>
    %139 = vector.shape_cast %138 : vector<8xf32> to vector<8x1xf32>
    %140 = vector.broadcast %139 : vector<8x1xf32> to vector<8x8xf32>
    %141 = arith.subf %137, %140 : vector<8x8xf32>
    %142 = math.exp %141 : vector<8x8xf32>
    %cst_68 = arith.constant dense<0.000000e+00> : vector<8xf32>
    %143 = vector.multi_reduction <add>, %142, %cst_68 [1] : vector<8x8xf32> to vector<8xf32>
    %144 = vector.shape_cast %143 : vector<8xf32> to vector<8x1xf32>
    %145 = tpu.reciprocal %144 : vector<8x1xf32> -> vector<8x1xf32>
    %146 = vector.broadcast %145 : vector<8x1xf32> to vector<8x8xf32>
    %147 = arith.mulf %142, %146 : vector<8x8xf32>
    %cst_69 = arith.constant dense<0.000000e+00> : vector<8x32xf32>
    %148 = tpu.matmul %147, %136, %cst_69 {dimension_numbers = #tpu.dot_dimension_numbers<[1], [0], [0], [1], [0, 0, 1, 1], [], []>} : vector<8x8xf32>, vector<8x32xf32>, vector<8x32xf32> -> vector<8x32xf32>
    %c64_70 = arith.constant 64 : index
    %c0_71 = arith.constant 0 : index
    %149 = vector.load %arg4[%c64_70, %c0_71] : memref<128x128xf32, #tpu.memory_space<vmem>>, vector<32x128xf32>
    %cst_72 = arith.constant dense<0.000000e+00> : vector<8x128xf32>
    %150 = tpu.matmul %148, %149, %cst_72 {dimension_numbers = #tpu.dot_dimension_numbers<[1], [0], [0], [1], [0, 0, 1, 1], [], []>} : vector<8x32xf32>, vector<32x128xf32>, vector<8x128xf32> -> vector<8x128xf32>
    %151 = arith.addf %133, %150 : vector<8x128xf32>
    %152 = vector.extract_strided_slice %7 {offsets = [8, 96], sizes = [8, 32], strides = [1, 1]} : vector<16x128xf32> to vector<8x32xf32>
    %153 = vector.extract_strided_slice %15 {offsets = [8, 96], sizes = [8, 32], strides = [1, 1]} : vector<16x128xf32> to vector<8x32xf32>
    %154 = vector.extract_strided_slice %23 {offsets = [8, 96], sizes = [8, 32], strides = [1, 1]} : vector<16x128xf32> to vector<8x32xf32>
    %cst_73 = arith.constant dense<0.000000e+00> : vector<8x8xf32>
    %155 = tpu.matmul %152, %153, %cst_73 {dimension_numbers = #tpu.dot_dimension_numbers<[1], [1], [0], [0], [0, 0, 1, 0], [], []>} : vector<8x32xf32>, vector<8x32xf32>, vector<8x8xf32> -> vector<8x8xf32>
    %cst_74 = arith.constant dense<0xFF800000> : vector<8xf32>
    %156 = vector.multi_reduction <maximumf>, %155, %cst_74 [1] : vector<8x8xf32> to vector<8xf32>
    %157 = vector.shape_cast %156 : vector<8xf32> to vector<8x1xf32>
    %158 = vector.broadcast %157 : vector<8x1xf32> to vector<8x8xf32>
    %159 = arith.subf %155, %158 : vector<8x8xf32>
    %160 = math.exp %159 : vector<8x8xf32>
    %cst_75 = arith.constant dense<0.000000e+00> : vector<8xf32>
    %161 = vector.multi_reduction <add>, %160, %cst_75 [1] : vector<8x8xf32> to vector<8xf32>
    %162 = vector.shape_cast %161 : vector<8xf32> to vector<8x1xf32>
    %163 = tpu.reciprocal %162 : vector<8x1xf32> -> vector<8x1xf32>
    %164 = vector.broadcast %163 : vector<8x1xf32> to vector<8x8xf32>
    %165 = arith.mulf %160, %164 : vector<8x8xf32>
    %cst_76 = arith.constant dense<0.000000e+00> : vector<8x32xf32>
    %166 = tpu.matmul %165, %154, %cst_76 {dimension_numbers = #tpu.dot_dimension_numbers<[1], [0], [0], [1], [0, 0, 1, 1], [], []>} : vector<8x8xf32>, vector<8x32xf32>, vector<8x32xf32> -> vector<8x32xf32>
    %c96_77 = arith.constant 96 : index
    %c0_78 = arith.constant 0 : index
    %167 = vector.load %arg4[%c96_77, %c0_78] : memref<128x128xf32, #tpu.memory_space<vmem>>, vector<32x128xf32>
    %cst_79 = arith.constant dense<0.000000e+00> : vector<8x128xf32>
    %168 = tpu.matmul %166, %167, %cst_79 {dimension_numbers = #tpu.dot_dimension_numbers<[1], [0], [0], [1], [0, 0, 1, 1], [], []>} : vector<8x32xf32>, vector<32x128xf32>, vector<8x128xf32> -> vector<8x128xf32>
    %169 = arith.addf %151, %168 : vector<8x128xf32>
    %170 = vector.broadcast %24 : vector<1x128xf32> to vector<8x128xf32>
    %171 = arith.addf %169, %170 : vector<8x128xf32>
    %c8 = arith.constant 8 : index
    %c0_80 = arith.constant 0 : index
    %172 = vector.load %arg6[%c8, %c0_80] : memref<16x128xf32, #tpu.memory_space<vmem>>, vector<8x128xf32>
    tpu.vector_store %arg6[%c8, %c0_80], %171 {strides = array<i32>} : memref<16x128xf32, #tpu.memory_space<vmem>>, vector<8x128xf32>,
    return
  }
  func.func @transform_0(%arg0: i32) -> (i32, i32, i32) {
    %c0_i32 = arith.constant 0 : i32
    %c0_i32_0 = arith.constant 0 : i32
    %c0_i32_1 = arith.constant 0 : i32
    return %c0_i32, %arg0, %c0_i32_0 : i32, i32, i32
  }
  func.func @transform_1(%arg0: i32) -> (i32, i32, i32) {
    %c0_i32 = arith.constant 0 : i32
    %c0_i32_0 = arith.constant 0 : i32
    %c0_i32_1 = arith.constant 0 : i32
    %c0_i32_2 = arith.constant 0 : i32
    return %c0_i32, %c0_i32_0, %c0_i32_1 : i32, i32, i32
  }
  func.func @transform_2(%arg0: i32) -> (i32, i32) {
    %c0_i32 = arith.constant 0 : i32
    %c0_i32_0 = arith.constant 0 : i32
    %c0_i32_1 = arith.constant 0 : i32
    return %c0_i32, %c0_i32_0 : i32, i32
  }
  func.func @transform_3(%arg0: i32) -> (i32, i32) {
    %c0_i32 = arith.constant 0 : i32
    %c0_i32_0 = arith.constant 0 : i32
    %c0_i32_1 = arith.constant 0 : i32
    return %c0_i32, %c0_i32_0 : i32, i32
  }
  func.func @transform_4(%arg0: i32) -> (i32, i32) {
    %c0_i32 = arith.constant 0 : i32
    %c0_i32_0 = arith.constant 0 : i32
    %c0_i32_1 = arith.constant 0 : i32
    return %c0_i32, %c0_i32_0 : i32, i32
  }
  func.func @transform_5(%arg0: i32) -> (i32, i32) {
    %c0_i32 = arith.constant 0 : i32
    %c0_i32_0 = arith.constant 0 : i32
    return %arg0, %c0_i32 : i32, i32
  }
}

</mosaic_0001>

<bundles_post_ra>
// kernel: tpu_custom_call.1
= control target key start
LH: loop header
LB: loop body
LE: loop exit
PB: predicated region body
PF: predicated region fallthrough
CT: control target
= control target key end

     0   :  { %10 = vsyncpa [#allocation3], 0  ;;  %s1521_s0 = inlined_call_operand.hbm [shape: f32[3,16,128], index: 0, kind: input, shape index: {}]   ;;  %s1522_s1 = inlined_call_operand.hbm [shape: f32[3,128,128], index: 1, kind: input, shape index: {}]   ;;  %s1523_s2 = inlined_call_operand.hbm [shape: f32[3,128], index: 2, kind: input, shape index: {}]   ;;  %s1524_s3 = inlined_call_operand.hbm [shape: f32[128,128], index: 3, kind: input, shape index: {}]   ;;  %s1525_s4 = inlined_call_operand.vmem [shape: f32[1,128], index: 4, kind: input, shape index: {}]   ;;  %s1526_s5 = inlined_call_operand.hbm [shape: f32[16,128], index: 5, kind: output, shape index: {}]  }
   0x1   :  { %11 = vsyncpa [#allocation6], 0 }
   0x2   :  { %12 = vsyncpa [#allocation9], 0 }
   0x3   :  { %13 = vsyncpa [#allocation4], 0  ;;  %s31_s20 = sshll.u32 %s1522_s1, 4  ;;  %s1288_s21 = smov [#allocation5]   ;;  %s32_s20 = int_to_ptr.hbm [resolvable:$true] %s31_s20 }
   0x4   :  { %s33_s22 = sshll.u32 %s1288_s21, 4  ;;  %s18_s25 = sshll.u32 %s1521_s0, 4  ;;  %s34_s22 = int_to_ptr.vmem [resolvable:$true] %s33_s22  ;;  %s19_s25 = int_to_ptr.hbm [resolvable:$true] %s18_s25 }
   0x5   :  { %s1289_s26 = smov 128   ;;  %s1290_s27 = smov 8  }
   0x6   :  { %39 = dma.hbm_to_vmem [thread:$0]  %s32_s20, 6144, %s34_s22, [#allocation6], %s1289_s26, %s1289_s26, %s1290_s27  }
   0x7   :  { %s1291_s28 = smov [#allocation2]   ;;  %s45_s1 = sshll.u32 %s1523_s2, 4  ;;  %s46_s1 = int_to_ptr.hbm [resolvable:$true] %s45_s1 }
   0x8   :  { %s20_s29 = sshll.u32 %s1291_s28, 4  ;;  %s55_s8 = sshll.u32 %s1524_s3, 4  ;;  %s21_s29 = int_to_ptr.vmem [resolvable:$true] %s20_s29  ;;  %s56_s8 = int_to_ptr.hbm [resolvable:$true] %s55_s8 }
   0x9   :  { %26 = dma.hbm_to_vmem [thread:$0]  %s19_s25, 768, %s21_s29, [#allocation3], %s1289_s26, %s1289_s26, %s1290_s27  }
   0xa   :  { %s1292_s9 = smov [#allocation7]   ;;  %s1293_s11 = smov [#allocation8]  }
   0xb   :  { %s47_s10 = sshll.u32 %s1292_s9, 4  ;;  %s57_s12 = sshll.u32 %s1293_s11, 4  ;;  %s48_s10 = int_to_ptr.vmem [resolvable:$true] %s47_s10  ;;  %s58_s12 = int_to_ptr.vmem [resolvable:$true] %s57_s12 }
   0xc   :  { %50 = dma.hbm_to_vmem [thread:$0]  %s46_s1, 64, %s48_s10, [#allocation6]  }
   0xd   :  { %63 = dma.hbm_to_vmem [thread:$0]  %s56_s8, 2048, %s58_s12, [#allocation9], %s1289_s26, %s1289_s26, %s1290_s27  }
   0xe   :  { %1280 = dma.done.wait [#allocation3], 768  }
   0xf   :  { %1281 = vsyncadd [#allocation3], 4294966528 }
  0x10   :  { %1282 = dma.done.wait [#allocation6], 6208  }
  0x11   :  { %1283 = vsyncadd [#allocation6], 4294961088 }
  0x12   :  { %1284 = dma.done.wait [#allocation9], 2048  }
  0x13   :  { %1285 = vsyncadd [#allocation9], 4294965248  ;;  %v144_v0 = vld [vmem:[#allocation5 + $0xf8] sm:$0xff]  ;;  %v143_v1 = vld [vmem:[#allocation5 + $0xf0] sm:$0xff]  ;;  %vm216_vm0 = vcmask 261120   ;;  %s1294_s2 = smov 96  }
  0x14   :  { %v99_v2 = vld [vmem:[#allocation5 + $0x78] sm:$0xff]  ;;  %147 = vmatpush.msra.mxu1 %v144_v0  ;;  %v98_v3 = vld [vmem:[#allocation5 + $0x70] sm:$0xff]  ;;  %v142_v4 = vld [vmem:[#allocation5 + $0xe8] sm:$0xff]  ;;  %s1295_s3 = smov 64   ;;  %vm243_vm1 = vcmask 64512   ;;  %s1296_s13 = smov 32  }
  0x15   :  { %102 = vmatpush.msra.mxu0 %v99_v2  ;;  %v97_v5 = vld [vmem:[#allocation5 + $0x68] sm:$0xff]  ;;  %v141_v6 = vld [vmem:[#allocation5 + $0xe0] sm:$0xff]  ;;  %v140_v8 = vld [vmem:[#allocation5 + $0xd8] sm:$0xff]  ;;  %s1067_s19 = sshll.u32 %s1526_s5, 4  ;;  %s1068_s19 = int_to_ptr.hbm [resolvable:$true] %s1067_s19 }
  0x16   :  { %148 = vmatpush.msra.mxu1 %v143_v1  ;;  %v96_v7 = vld [vmem:[#allocation5 + $0x60] sm:$0xff]  ;;  %v95_v9 = vld [vmem:[#allocation5 + $0x58] sm:$0xff]  ;;  %v139_v10 = vld [vmem:[#allocation5 + $0xd0] sm:$0xff] }
  0x17   :  { %103 = vmatpush.msra.mxu0 %v98_v3  ;;  %v94_v11 = vld [vmem:[#allocation5 + $0x50] sm:$0xff]  ;;  %v138_v12 = vld [vmem:[#allocation5 + $0xc8] sm:$0xff]  ;;  %v189_v14 = vld [vmem:[#allocation5 + $0x178] sm:$0xff] }
  0x18   :  { %149 = vmatpush.msra.mxu1 %v142_v4  ;;  %v93_v13 = vld [vmem:[#allocation5 + $0x48] sm:$0xff]  ;;  %v188_v15 = vld [vmem:[#allocation5 + $0x170] sm:$0xff]  ;;  %v137_v16 = vld [vmem:[#allocation5 + $0xc0] sm:$0xff]  ;;  %192 = vmatpush.msra.mxu2 %v189_v14 }
  0x19   :  { %104 = vmatpush.msra.mxu0 %v97_v5  ;;  %v92_v17 = vld [vmem:[#allocation5 + $0x40] sm:$0xff]  ;;  %v187_v18 = vld [vmem:[#allocation5 + $0x168] sm:$0xff]  ;;  %v136_v19 = vld [vmem:[#allocation5 + $0xb8] sm:$0xff] }
  0x1a   :  { %150 = vmatpush.msra.mxu1 %v141_v6  ;;  %v91_v20 = vld [vmem:[#allocation5 + $0x38] sm:$0xff]  ;;  %193 = vmatpush.msra.mxu2 %v188_v15  ;;  %v186_v21 = vld [vmem:[#allocation5 + $0x160] sm:$0xff]  ;;  %v135_v22 = vld [vmem:[#allocation5 + $0xb0] sm:$0xff] }
  0x1b   :  { %105 = vmatpush.msra.mxu0 %v96_v7  ;;  %v134_v23 = vld [vmem:[#allocation5 + $0xa8] sm:$0xff]  ;;  %v90_v24 = vld [vmem:[#allocation5 + $0x30] sm:$0xff]  ;;  %v185_v25 = vld [vmem:[#allocation5 + $0x158] sm:$0xff] }
  0x1c   :  { %151 = vmatpush.msra.mxu1 %v140_v8  ;;  %194 = vmatpush.msra.mxu2 %v187_v18  ;;  %v89_v26 = vld [vmem:[#allocation5 + $0x28] sm:$0xff]  ;;  %v184_v27 = vld [vmem:[#allocation5 + $0x150] sm:$0xff]  ;;  %v133_v28 = vld [vmem:[#allocation5 + $0xa0] sm:$0xff] }
  0x1d   :  { %106 = vmatpush.msra.mxu0 %v95_v9  ;;  %v88_v29 = vld [vmem:[#allocation5 + $0x20] sm:$0xff]  ;;  %v183_v30 = vld [vmem:[#allocation5 + $0x148] sm:$0xff]  ;;  %v132_v31 = vld [vmem:[#allocation5 + $0x98] sm:$0xff] }
  0x1e   :  { %152 = vmatpush.msra.mxu1 %v139_v10  ;;  %195 = vmatpush.msra.mxu2 %v186_v21  ;;  %v87_v32 = vld [vmem:[#allocation5 + $0x18] sm:$0xff]  ;;  %v182_v33 = vld [vmem:[#allocation5 + $0x140] sm:$0xff]  ;;  %v131_v34 = vld [vmem:[#allocation5 + $0x90] sm:$0xff] }
  0x1f   :  { %107 = vmatpush.msra.mxu0 %v94_v11  ;;  %v86_v35 = vld [vmem:[#allocation5 + $0x10] sm:$0xff]  ;;  %v181_v36 = vld [vmem:[#allocation5 + $0x138] sm:$0xff]  ;;  %v130_v37 = vld [vmem:[#allocation5 + $0x88] sm:$0xff] }
  0x20   :  { %153 = vmatpush.msra.mxu1 %v138_v12  ;;  %196 = vmatpush.msra.mxu2 %v185_v25  ;;  %v85_v38 = vld [vmem:[#allocation5 + $0x8] sm:$0xff]  ;;  %v180_v39 = vld [vmem:[#allocation5 + $0x130] sm:$0xff]  ;;  %v129_v40 = vld [vmem:[#allocation5 + $0x80] sm:$0xff] }
  0x21   :  { %108 = vmatpush.msra.mxu0 %v93_v13  ;;  %v84_v41 = vld [vmem:[#allocation5] sm:$0xff]  ;;  %v82_v43 = vld [vmem:[#allocation2] sm:$0xff]  ;;  %v179_v44 = vld [vmem:[#allocation5 + $0x128] sm:$0xff] }
  0x22   :  { %154 = vmatpush.msra.mxu1 %v137_v16  ;;  %197 = vmatpush.msra.mxu2 %v184_v27  ;;  %v126_v42 = vld [vmem:[#allocation2 + $0x10] sm:$0xff]  ;;  %v177_v46 = vld [vmem:[#allocation5 + $0x118] sm:$0xff]  ;;  %v176_v47 = vld [vmem:[#allocation5 + $0x110] sm:$0xff] }
  0x23   :  { %109 = vmatpush.msra.mxu0 %v92_v17  ;;  %v178_v45 = vld [vmem:[#allocation5 + $0x120] sm:$0xff]  ;;  %v175_v48 = vld [vmem:[#allocation5 + $0x108] sm:$0xff]  ;;  %v171_v50 = vld [vmem:[#allocation2 + $0x20] sm:$0xff] }
  0x24   :  { %155 = vmatpush.msra.mxu1 %v136_v19  ;;  %198 = vmatpush.msra.mxu2 %v183_v30  ;;  %v174_v49 = vld [vmem:[#allocation5 + $0x100] sm:$0xff]  ;;  %v83_v60 = vld [vmem:[#allocation2 + $0x8] sm:$0xff] }
  0x25   :  { %110 = vmatpush.msra.mxu0 %v91_v20  ;;  %v1349_v51 = vld [vmem:[#allocation7 + $0x1] ss:$0 sm:$0xff]  ;;  %v1351_v52 = vld [vmem:[#allocation7] ss:$0 sm:$0xff]  ;;  %v1366_v57 = vld [vmem:[#allocation7 + $0x2] ss:$0 sm:$0xff] }
  0x26   :  { %156 = vmatpush.msra.mxu1 %v135_v22  ;;  %199 = vmatpush.msra.mxu2 %v182_v33 }
  0x27   :  { %111 = vmatpush.msra.mxu0 %v90_v24 }
  0x28   :  { %157 = vmatpush.msra.mxu1 %v134_v23  ;;  %200 = vmatpush.msra.mxu2 %v181_v36 }
  0x29   :  { %112 = vmatpush.msra.mxu0 %v89_v26 }
  0x2a   :  { %158 = vmatpush.msra.mxu1 %v133_v28  ;;  %201 = vmatpush.msra.mxu2 %v180_v39 }
  0x2b   :  { %113 = vmatpush.msra.mxu0 %v88_v29  ;;  %v127_v29 = vld [vmem:[#allocation2 + $0x18] sm:$0xff] }
  0x2c   :  { %159 = vmatpush.msra.mxu1 %v132_v31  ;;  %202 = vmatpush.msra.mxu2 %v179_v44 }
  0x2d   :  { %114 = vmatpush.msra.mxu0 %v87_v32 }
  0x2e   :  { %160 = vmatpush.msra.mxu1 %v131_v34  ;;  %203 = vmatpush.msra.mxu2 %v178_v45  ;;  %v172_v45 = vld [vmem:[#allocation2 + $0x28] sm:$0xff] }
  0x2f   :  { %115 = vmatpush.msra.mxu0 %v86_v35 }
  0x30   :  { %161 = vmatpush.msra.mxu1 %v130_v37  ;;  %204 = vmatpush.msra.mxu2 %v177_v46  ;;  %v1392_v46 = vld [vmem:[#allocation8 + $0x58] sm:$0xff] }
  0x31   :  { %116 = vmatpush.msra.mxu0 %v85_v38 }
  0x32   :  { %162 = vmatpush.msra.mxu1 %v129_v40  ;;  %205 = vmatpush.msra.mxu2 %v176_v47  ;;  %v1394_v47 = vld [vmem:[#allocation8 + $0x50] sm:$0xff] }
  0x33   :  { %117 = vmatpush.msra.mxu0 %v84_v41  ;;  %163 = vmatmul.f32.vlgmr.msra.gmra.mxu1 %v126_v42 }
  0x34   :  { %118 = vmatmul.f32.vlgmr.msra.gmra.mxu0 %v82_v43  ;;  %206 = vmatpush.msra.mxu2 %v175_v48  ;;  %v1397_v48 = vld [vmem:[#allocation8 + $0x48] sm:$0xff] }
  0x36   :  { %207 = vmatpush.msra.mxu2 %v174_v49 }
  0x37   :  { %208 = vmatmul.f32.vlgmr.msra.gmra.mxu2 %v171_v50 }
  0x38   :  { %521 = vmatpush.msrb.mxu2 %v1392_v46 }
  0x3a   :  { %522 = vmatpush.msrb.mxu2 %v1394_v47 }
  0x3b   :  { %166 = vmatmul.f32.gmra.mxu1 %v127_v29 }
  0x3c   :  { %121 = vmatmul.f32.gmra.mxu0 %v83_v60  ;;  %523 = vmatpush.msrb.mxu2 %v1397_v48 }
  0x3f   :  { %211 = vmatmul.f32.gmra.mxu2 %v172_v45 }
  0xb0   :  { %v164_v53 = vpop.f32.mrf.mxu1 }
  0xb1   :  { %v119_v54 = vpop.f32.mrf.mxu0  ;;  %v1354_v55 = vadd.f32 %v1349_v51, %v164_v53  ;;  %v1406_v53 = vld [vmem:[#allocation8 + $0x40] sm:$0xff] }
  0xb2   :  { %v120_v56 = vadd.f32 %v1351_v52, %v119_v54  ;;  %524 = vmatpush.msrb.mxu2 %v1406_v53 }
  0xb3   :  { %297 = vrot.lane.b32.xlu2 %v1354_v55, %s1294_s2  ;;  %426 = vrot.lane.b32.xlu0 %v1354_v55, %s1295_s3 }
  0xb4   :  { %1082 = vmatpush.xpose.msk.msra.mxu3 %vm216_vm0, %v1354_v55 }
  0xb7   :  { %1083 = vmatmul.msk.f32.vlgmr.msra.gmra.mxu3 %vm216_vm0, %v120_v56 }
  0xb8   :  { %v167_v49 = vpop.f32.mrf.mxu1 }
  0xb9   :  { %v1378_v2 = vpop.f32.mrf.mxu0  ;;  %v1404_v50 = vadd.f32 %v1349_v51, %v167_v49 }
  0xba   :  { %v209_v58 = vpop.f32.mrf.mxu2 }
  0xbb   :  { %295 = vrot.lane.b32.xlu2 %v120_v56, %s1294_s2  ;;  %424 = vrot.lane.b32.xlu0 %v120_v56, %s1295_s3  ;;  %v1369_v59 = vadd.f32 %v1366_v57, %v209_v58 }
  0xbc   :  { %1098 = vmatpush.xpose.msk.msra.mxu2 %vm216_vm0, %v1404_v50 }
  0xbd   :  { %286 = vmatpush.msrb.mxu3 %v1369_v59 }
  0xc3   :  { %476 = vrot.lane.b32.xlu2 %v1369_v59, %s1295_s3 }
 0x10d   :  { %v298_v61 = vpop.permute.xlu2 %297 }
 0x10e   :  { %1085 = vmatpush.xpose.msk.msra.mxu3 %vm216_vm0, %v298_v61 }
 0x115   :  { %v296_v12 = vpop.permute.xlu2 %295 }
 0x11d   :  { %v477_v15 = vpop.permute.xlu2 %476 }
 0x11e   :  { %497 = vmatpush.msrb.mxu1 %v477_v15  ;;  %v377_v15 = vld [vmem:[#allocation8 + $0x38] sm:$0xff] }
 0x125   :  { %v427_v62 = vpop.permute.xlu0 %426 }
 0x126   :  { %1090 = vmatpush.xpose.msk.msrb.mxu0 %vm216_vm0, %v427_v62 }
 0x12d   :  { %v425_v63 = vpop.permute.xlu0 %424 }
 0x12e   :  { %1091 = vmatmul.msk.f32.vlgmr.msrb.gmra.mxu0 %vm216_vm0, %v425_v63  ;;  %v212_v63 = vpop.f32.mrf.mxu2 }
 0x12f   :  { %v1433_v29 = vadd.f32 %v1366_v57, %v212_v63 }
 0x13a   :  { %v240_v0 = vpop.f32.mrf.mxu3 }
 0x13b   :  { %v244_v1 = vsel %vm243_vm1, %v240_v0, -inf }
 0x13c   :  { %245 = vmax.xlane.f32.xlu1 %v244_v1 }
 0x1ab   :  { %v449_v3 = vpop.f32.mrf.mxu0 }
 0x1ac   :  { %v452_v4 = vsel %vm243_vm1, %v449_v3, -inf }
 0x1ad   :  { %453 = vmax.xlane.f32.xlu0 %v452_v4 }
 0x1af   :  { %v246_v5 = vpop.xlane.xlu1 %245 }
 0x1b0   :  { %v247_v6 = vsub.f32 %v240_v0, %v246_v5 }
 0x1b2   :  { %v248_v7 = vmul.f32 1.442695, %v247_v6 }
 0x1b4   :  { %1128 = vpow2.f32 %v248_v7 }
 0x1ba   :  { %v1129_v8 = vpop.eup %1128 }
 0x1bb   :  { %v250_v9 = vsel %vm243_vm1, %v1129_v8, 0.0 }
 0x1bc   :  { %251 = vadd.xlane.f32.xlu1 %v250_v9 }
 0x1c1   :  { %530 = vrot.lane.b32.xlu0 %v120_v56, %s1296_s13  ;;  %v1414_v56 = vadd.f32 %v1351_v52, %v1378_v2 }
 0x220   :  { %v454_v10 = vpop.xlane.xlu0 %453 }
 0x221   :  { %v455_v11 = vsub.f32 %v449_v3, %v454_v10 }
 0x223   :  { %v456_v13 = vmul.f32 1.442695, %v455_v11 }
 0x225   :  { %1130 = vpow2.f32 %v456_v13 }
 0x22b   :  { %v1131_v14 = vpop.eup %1130 }
 0x22c   :  { %v458_v16 = vsel %vm243_vm1, %v1131_v14, 0.0 }
 0x22d   :  { %459 = vadd.xlane.f32.xlu1 %v458_v16  ;;  %v376_v16 = vld [vmem:[#allocation8 + $0x30] sm:$0xff] }
 0x22f   :  { %v252_v17 = vpop.xlane.xlu1 %251 }
 0x230   :  { %1132 = vrcp.f32 %v252_v17  ;;  %v264_v21 = vand.u32 2147483648, %v252_v17  ;;  %v262_v23 = vand.u32 2147483647, %v252_v17  ;;  %vm258_vm3 = vweird.f32 %v252_v17 }
 0x232   :  { %v265_v25 = vor.u32 1.1754944e-38, %v264_v21  ;;  %vm263_vm5 = vcmp.eq.f32.partialorder %v262_v23, 8.507059e+37  ;;  %v292_v23 = vld [vmem:[#allocation8 + $0x8] sm:$0xff] }
 0x236   :  { %v1133_v18 = vpop.eup %1132 }
 0x237   :  { %v254_v19 = vmul.f32 %v1133_v18, %v252_v17  ;;  %vm259_vm2 = vweird.f32 %v1133_v18  ;;  %v375_v17 = vld [vmem:[#allocation8 + $0x28] sm:$0xff] }
 0x238   :  { %vm260_vm4 = vmor %vm258_vm3, %vm259_vm2 }
 0x239   :  { %v255_v20 = vsub.f32 1.0, %v254_v19  ;;  %v294_v19 = vld [vmem:[#allocation8 + $0x18] sm:$0xff] }
 0x23b   :  { %v256_v22 = vmul.f32 %v1133_v18, %v255_v20  ;;  %v293_v20 = vld [vmem:[#allocation8 + $0x10] sm:$0xff] }
 0x23d   :  { %v257_v24 = vadd.f32 %v1133_v18, %v256_v22 }
 0x23f   :  { %v261_v26 = vsel %vm260_vm4, %v1133_v18, %v257_v24  ;;  %v374_v18 = vld [vmem:[#allocation8 + $0x20] sm:$0xff] }
 0x240   :  { %v266_v27 = vsel %vm263_vm5, %v265_v25, %v261_v26  ;;  %v291_v25 = vld [vmem:[#allocation8] sm:$0xff] }
 0x241   :  { %v267_v28 = vmul.f32 %v1129_v8, %v266_v27 }
 0x243   :  { %1084 = vmatmul.msk.f32.vlgmr.msrb.gmra.mxu3 %vm243_vm1, %v267_v28 }
 0x24b   :  { %1086 = vmatmul.msk.f32.vlgmr.msra.gmra.mxu3 %vm216_vm0, %v296_v12 }
 0x2a0   :  { %v460_v30 = vpop.xlane.xlu1 %459 }
 0x2a1   :  { %1134 = vrcp.f32 %v460_v30  ;;  %v472_v34 = vand.u32 2147483648, %v460_v30  ;;  %v470_v36 = vand.u32 2147483647, %v460_v30  ;;  %vm466_vm7 = vweird.f32 %v460_v30 }
 0x2a3   :  { %v473_v38 = vor.u32 1.1754944e-38, %v472_v34  ;;  %vm471_vm9 = vcmp.eq.f32.partialorder %v470_v36, 8.507059e+37 }
 0x2a7   :  { %v1135_v31 = vpop.eup %1134 }
 0x2a8   :  { %v462_v32 = vmul.f32 %v1135_v31, %v460_v30  ;;  %vm467_vm6 = vweird.f32 %v1135_v31  ;;  %v531_v30 = vpop.permute.xlu0 %530 }
 0x2a9   :  { %vm468_vm8 = vmor %vm466_vm7, %vm467_vm6 }
 0x2aa   :  { %v463_v33 = vsub.f32 1.0, %v462_v32 }
 0x2ac   :  { %v464_v35 = vmul.f32 %v1135_v31, %v463_v33 }
 0x2ae   :  { %v465_v37 = vadd.f32 %v1135_v31, %v464_v35 }
 0x2b0   :  { %v469_v39 = vsel %vm468_vm8, %v1135_v31, %v465_v37 }
 0x2b1   :  { %v474_v40 = vsel %vm471_vm9, %v473_v38, %v469_v39 }
 0x2b2   :  { %v475_v41 = vmul.f32 %v1131_v14, %v474_v40 }
 0x2b4   :  { %1092 = vmatmul.msk.f32.vlgmr.msrb.gmra.mxu1 %vm243_vm1, %v475_v41 }
 0x2c6   :  { %v1387_v42 = vpop.f32.mrf.mxu3 }
 0x2ce   :  { %v320_v43 = vpop.f32.mrf.mxu3 }
 0x2cf   :  { %v323_v44 = vsel %vm243_vm1, %v320_v43, -inf }
 0x2d0   :  { %324 = vmax.xlane.f32.xlu1 %v323_v44 }
 0x2e9   :  { %348 = vrot.lane.b32.xlu1 %v1369_v59, %s1294_s2 }
 0x2f1   :  { %532 = vrot.lane.b32.xlu1 %v1354_v55, %s1296_s13 }
 0x331   :  { %v499_v54 = vpop.f32.mrf.mxu1 }
 0x332   :  { %1093 = vmatmul.msk.f32.vlgmr.msrb.gmra.mxu2 %vm216_vm0, %v499_v54 }
 0x333   :  { %816 = vmatpush.msrb.mxu2 %v377_v15 }
 0x335   :  { %817 = vmatpush.msrb.mxu2 %v376_v16 }
 0x337   :  { %818 = vmatpush.msrb.mxu2 %v375_v17 }
 0x339   :  { %819 = vmatpush.msrb.mxu2 %v374_v18 }
 0x33a   :  { %1099 = vmatmul.msk.f32.vlgmr.msra.gmra.mxu2 %vm216_vm0, %v1414_v56 }
 0x33b   :  { %944 = vmatpush.msra.mxu2 %v1392_v46 }
 0x33d   :  { %945 = vmatpush.msra.mxu2 %v1394_v47 }
 0x33f   :  { %946 = vmatpush.msra.mxu2 %v1397_v48 }
 0x341   :  { %947 = vmatpush.msra.mxu2 %v1406_v53 }
 0x343   :  { %v325_v55 = vpop.xlane.xlu1 %324 }
 0x344   :  { %v326_v51 = vsub.f32 %v320_v43, %v325_v55 }
 0x346   :  { %v327_v58 = vmul.f32 1.442695, %v326_v51 }
 0x348   :  { %1136 = vpow2.f32 %v327_v58 }
 0x34e   :  { %v1137_v60 = vpop.eup %1136 }
 0x34f   :  { %v329_v61 = vsel %vm243_vm1, %v1137_v60, 0.0 }
 0x350   :  { %330 = vadd.xlane.f32.xlu2 %v329_v61  ;;  %v1460_v61 = vld [vmem:[#allocation8 + $0x70] sm:$0xff] }
 0x35b   :  { %v349_v62 = vpop.permute.xlu1 %348 }
 0x35c   :  { %369 = vmatpush.msrb.mxu3 %v349_v62  ;;  %v1463_v62 = vld [vmem:[#allocation8 + $0x68] sm:$0xff] }
 0x35e   :  { %393 = vmatpush.msra.mxu3 %v377_v15 }
 0x360   :  { %394 = vmatpush.msra.mxu3 %v376_v16 }
 0x362   :  { %395 = vmatpush.msra.mxu3 %v375_v17 }
 0x363   :  { %v533_v14 = vpop.permute.xlu1 %532 }
 0x364   :  { %396 = vmatpush.msra.mxu3 %v374_v18 }
 0x3b5   :  { %v1419_v0 = vpop.f32.mrf.mxu2 }
 0x3bd   :  { %v664_v1 = vpop.f32.mrf.mxu2 }
 0x3be   :  { %v667_v52 = vsel %vm243_vm1, %v664_v1, -inf }
 0x3bf   :  { %668 = vmax.xlane.f32.xlu1 %v667_v52 }
 0x3c3   :  { %v331_v2 = vpop.xlane.xlu2 %330 }
 0x3c4   :  { %1138 = vrcp.f32 %v331_v2  ;;  %v343_v6 = vand.u32 2147483648, %v331_v2  ;;  %v341_v8 = vand.u32 2147483647, %v331_v2  ;;  %vm337_vm11 = vweird.f32 %v331_v2 }
 0x3c6   :  { %v344_v10 = vor.u32 1.1754944e-38, %v343_v6  ;;  %vm342_vm13 = vcmp.eq.f32.partialorder %v341_v8, 8.507059e+37 }
 0x3ca   :  { %v1139_v3 = vpop.eup %1138 }
 0x3cb   :  { %v333_v4 = vmul.f32 %v1139_v3, %v331_v2  ;;  %vm338_vm10 = vweird.f32 %v1139_v3 }
 0x3cc   :  { %vm339_vm12 = vmor %vm337_vm11, %vm338_vm10 }
 0x3cd   :  { %v334_v5 = vsub.f32 1.0, %v333_v4 }
 0x3cf   :  { %v335_v7 = vmul.f32 %v1139_v3, %v334_v5 }
 0x3d1   :  { %v336_v9 = vadd.f32 %v1139_v3, %v335_v7 }
 0x3d3   :  { %v340_v11 = vsel %vm339_vm12, %v1139_v3, %v336_v9 }
 0x3d4   :  { %v345_v12 = vsel %vm342_vm13, %v344_v10, %v340_v11 }
 0x3d5   :  { %v346_v13 = vmul.f32 %v1137_v60, %v345_v12  ;;  %v1458_v60 = vld [vmem:[#allocation8 + $0x78] sm:$0xff] }
 0x3d6   :  { %627 = vmatpush.msra.mxu1 %v1458_v60 }
 0x3d7   :  { %1087 = vmatmul.msk.f32.vlgmr.msrb.gmra.mxu3 %vm243_vm1, %v346_v13  ;;  %v1473_v13 = vld [vmem:[#allocation8 + $0x60] sm:$0xff] }
 0x3d8   :  { %718 = vrot.lane.b32.xlu1 %v1414_v56, %s1294_s2  ;;  %416 = vmatpush.msrb.mxu3 %v294_v19 }
 0x3d9   :  { %628 = vmatpush.msra.mxu1 %v1460_v61 }
 0x3da   :  { %417 = vmatpush.msrb.mxu3 %v293_v20 }
 0x3db   :  { %629 = vmatpush.msra.mxu1 %v1463_v62 }
 0x3dc   :  { %418 = vmatpush.msrb.mxu3 %v292_v23 }
 0x3dd   :  { %630 = vmatpush.msra.mxu1 %v1473_v13 }
 0x3de   :  { %419 = vmatpush.msrb.mxu3 %v291_v25 }
 0x432   :  { %v669_v21 = vpop.xlane.xlu1 %668 }
 0x433   :  { %v670_v22 = vsub.f32 %v664_v1, %v669_v21 }
 0x435   :  { %v671_v24 = vmul.f32 1.442695, %v670_v22 }
 0x437   :  { %1140 = vpow2.f32 %v671_v24  ;;  %v1487_v24 = vld [vmem:[%s1525_s4] ss:$0 sm:$0xff]  ;;  %s1297_s4 = smov [#allocation10]  }
 0x438   :  { %s1065_s16 = sshll.u32 %s1297_s4, 4  ;;  %s1066_s16 = int_to_ptr.vmem [resolvable:$true] %s1065_s16 }
 0x43d   :  { %v1141_v26 = vpop.eup %1140 }
 0x43e   :  { %v673_v27 = vsel %vm243_vm1, %v1141_v26, 0.0 }
 0x43f   :  { %674 = vadd.xlane.f32.xlu2 %v673_v27 }
 0x44a   :  { %v719_v12 = vpop.permute.xlu1 %718 }
 0x45a   :  { %v371_v28 = vpop.f32.mrf.mxu3 }
 0x45b   :  { %1088 = vmatmul.msk.f32.vlgmr.msra.gmra.mxu3 %vm216_vm0, %v371_v28 }
 0x45c   :  { %1094 = vmatpush.xpose.msk.msra.mxu3 %vm216_vm0, %v533_v14 }
 0x463   :  { %1089 = vmatmul.msk.f32.vlgmr.msrb.gmra.mxu3 %vm216_vm0, %v1387_v42 }
 0x464   :  { %709 = vmatpush.msrb.mxu3 %v1433_v29 }
 0x46b   :  { %1095 = vmatmul.msk.f32.vlgmr.msra.gmra.mxu3 %vm216_vm0, %v531_v30 }
 0x46c   :  { %839 = vmatpush.msra.mxu3 %v294_v19 }
 0x46e   :  { %840 = vmatpush.msra.mxu3 %v293_v20 }
 0x470   :  { %841 = vmatpush.msra.mxu3 %v292_v23 }
 0x472   :  { %842 = vmatpush.msra.mxu3 %v291_v25 }
 0x4b2   :  { %v675_v31 = vpop.xlane.xlu2 %674 }
 0x4b3   :  { %1142 = vrcp.f32 %v675_v31  ;;  %v687_v35 = vand.u32 2147483648, %v675_v31  ;;  %v685_v36 = vand.u32 2147483647, %v675_v31  ;;  %vm681_vm15 = vweird.f32 %v675_v31 }
 0x4b5   :  { %v688_v38 = vor.u32 1.1754944e-38, %v687_v35  ;;  %vm686_vm3 = vcmp.eq.f32.partialorder %v685_v36, 8.507059e+37 }
 0x4b9   :  { %v1143_v32 = vpop.eup %1142 }
 0x4ba   :  { %v677_v33 = vmul.f32 %v1143_v32, %v675_v31  ;;  %vm682_vm14 = vweird.f32 %v1143_v32 }
 0x4bb   :  { %vm683_vm2 = vmor %vm681_vm15, %vm682_vm14 }
 0x4bc   :  { %v678_v34 = vsub.f32 1.0, %v677_v33 }
 0x4be   :  { %v679_v57 = vmul.f32 %v1143_v32, %v678_v34 }
 0x4c0   :  { %v680_v37 = vadd.f32 %v1143_v32, %v679_v57 }
 0x4c2   :  { %v684_v39 = vsel %vm683_vm2, %v1143_v32, %v680_v37 }
 0x4c3   :  { %v689_v40 = vsel %vm686_vm3, %v688_v38, %v684_v39 }
 0x4c4   :  { %v690_v41 = vmul.f32 %v1141_v26, %v689_v40 }
 0x4c6   :  { %1100 = vmatmul.msk.f32.vlgmr.msrb.gmra.mxu3 %vm243_vm1, %v690_v41 }
 0x4de   :  { %v398_v42 = vpop.f32.mrf.mxu3 }
 0x4e6   :  { %v421_v43 = vpop.f32.mrf.mxu3 }
 0x4e7   :  { %v1440_v44 = vadd.f32 %v421_v43, %v398_v42 }
 0x4e9   :  { %v529_v23 = vadd.f32 %v1419_v0, %v1440_v44 }
 0x4ee   :  { %v555_v45 = vpop.f32.mrf.mxu3 }
 0x4ef   :  { %v558_v46 = vsel %vm243_vm1, %v555_v45, -inf }
 0x4f0   :  { %559 = vmax.xlane.f32.xlu2 %v558_v46 }
 0x508   :  { %582 = vrot.lane.b32.xlu2 %v1369_v59, %s1296_s13 }
 0x510   :  { %720 = vrot.lane.b32.xlu2 %v1404_v50, %s1294_s2 }
 0x518   :  { %849 = vrot.lane.b32.xlu2 %v1404_v50, %s1295_s3 }
 0x520   :  { %847 = vrot.lane.b32.xlu2 %v1414_v56, %s1295_s3 }
 0x528   :  { %953 = vrot.lane.b32.xlu2 %v1414_v56, %s1296_s13 }
 0x549   :  { %v711_v47 = vpop.f32.mrf.mxu3 }
 0x54a   :  { %1105 = vmatmul.msk.f32.vlgmr.msra.gmra.mxu3 %vm216_vm0, %v711_v47 }
 0x563   :  { %v560_v48 = vpop.xlane.xlu2 %559 }
 0x564   :  { %v561_v49 = vsub.f32 %v555_v45, %v560_v48 }
 0x566   :  { %v562_v53 = vmul.f32 1.442695, %v561_v49 }
 0x568   :  { %1144 = vpow2.f32 %v562_v53 }
 0x56b   :  { %v583_v59 = vpop.permute.xlu2 %582 }
 0x56c   :  { %603 = vmatpush.msra.mxu0 %v583_v59 }
 0x56e   :  { %v1145_v54 = vpop.eup %1144 }
 0x56f   :  { %v564_v55 = vsel %vm243_vm1, %v1145_v54, 0.0 }
 0x570   :  { %565 = vadd.xlane.f32.xlu0 %v564_v55 }
 0x573   :  { %v721_v51 = vpop.permute.xlu2 %720 }
 0x574   :  { %1101 = vmatpush.xpose.msk.msrb.mxu0 %vm216_vm0, %v721_v51 }
 0x57b   :  { %v850_v58 = vpop.permute.xlu2 %849 }
 0x584   :  { %955 = vrot.lane.b32.xlu0 %v1404_v50, %s1296_s13  ;;  %v848_v50 = vpop.permute.xlu2 %847 }
 0x58c   :  { %v954_v11 = vpop.permute.xlu2 %953 }
 0x5cd   :  { %v1476_v15 = vpop.f32.mrf.mxu3 }
 0x5e3   :  { %v566_v56 = vpop.xlane.xlu0 %565 }
 0x5e4   :  { %1146 = vrcp.f32 %v566_v56  ;;  %v578_v2 = vand.u32 2147483648, %v566_v56  ;;  %v576_v4 = vand.u32 2147483647, %v566_v56  ;;  %vm572_vm5 = vweird.f32 %v566_v56 }
 0x5e6   :  { %v579_v6 = vor.u32 1.1754944e-38, %v578_v2  ;;  %vm577_vm7 = vcmp.eq.f32.partialorder %v576_v4, 8.507059e+37 }
 0x5ea   :  { %v1147_v63 = vpop.eup %1146 }
 0x5eb   :  { %v568_v1 = vmul.f32 %v1147_v63, %v566_v56  ;;  %vm573_vm4 = vweird.f32 %v1147_v63 }
 0x5ec   :  { %vm574_vm6 = vmor %vm572_vm5, %vm573_vm4 }
 0x5ed   :  { %v569_v52 = vsub.f32 1.0, %v568_v1 }
 0x5ef   :  { %v570_v3 = vmul.f32 %v1147_v63, %v569_v52 }
 0x5f1   :  { %v571_v5 = vadd.f32 %v1147_v63, %v570_v3 }
 0x5f3   :  { %v575_v7 = vsel %vm574_vm6, %v1147_v63, %v571_v5 }
 0x5f4   :  { %v580_v8 = vsel %vm577_vm7, %v579_v6, %v575_v7 }
 0x5f5   :  { %v581_v9 = vmul.f32 %v1145_v54, %v580_v8 }
 0x5f6   :  { %v956_v10 = vpop.permute.xlu0 %955 }
 0x5f7   :  { %1096 = vmatmul.msk.f32.vlgmr.msra.gmra.mxu0 %vm243_vm1, %v581_v9  ;;  %1110 = vmatpush.xpose.msk.msrb.mxu3 %vm216_vm0, %v956_v10 }
 0x5f8   :  { %1106 = vmatpush.xpose.msk.msra.mxu0 %vm216_vm0, %v850_v58 }
 0x5fa   :  { %1111 = vmatmul.msk.f32.vlgmr.msrb.gmra.mxu3 %vm216_vm0, %v954_v11 }
 0x5ff   :  { %1102 = vmatmul.msk.f32.vlgmr.msrb.gmra.mxu0 %vm216_vm0, %v719_v12 }
 0x607   :  { %1107 = vmatmul.msk.f32.vlgmr.msra.gmra.mxu0 %vm216_vm0, %v848_v50 }
 0x674   :  { %v605_v14 = vpop.f32.mrf.mxu0 }
 0x675   :  { %1097 = vmatmul.msk.f32.vlgmr.msra.gmra.mxu1 %vm216_vm0, %v605_v14 }
 0x67c   :  { %v743_v16 = vpop.f32.mrf.mxu0 }
 0x67d   :  { %v978_v17 = vpop.f32.mrf.mxu3  ;;  %v746_v18 = vsel %vm243_vm1, %v743_v16, -inf }
 0x67e   :  { %747 = vmax.xlane.f32.xlu1 %v746_v18  ;;  %v981_v19 = vsel %vm243_vm1, %v978_v17, -inf }
 0x67f   :  { %982 = vmax.xlane.f32.xlu0 %v981_v19 }
 0x684   :  { %v872_v20 = vpop.f32.mrf.mxu0 }
 0x685   :  { %v875_v21 = vsel %vm243_vm1, %v872_v20, -inf }
 0x686   :  { %876 = vmax.xlane.f32.xlu2 %v875_v21 }
 0x6f1   :  { %v748_v22 = vpop.xlane.xlu1 %747 }
 0x6f2   :  { %v749_v25 = vsub.f32 %v743_v16, %v748_v22  ;;  %v632_v26 = vpop.f32.mrf.mxu1  ;;  %v983_v27 = vpop.xlane.xlu0 %982 }
 0x6f3   :  { %v635_v28 = vadd.f32 %v632_v26, %v529_v23  ;;  %v984_v30 = vsub.f32 %v978_v17, %v983_v27 }
 0x6f4   :  { %v750_v31 = vmul.f32 1.442695, %v749_v25 }
 0x6f5   :  { %v639_v32 = vadd.f32 %v1487_v24, %v635_v28  ;;  %v985_v33 = vmul.f32 1.442695, %v984_v30 }
 0x6f6   :  { %1148 = vpow2.f32 %v750_v31 }
 0x6f7   :  { %640 = vst [vmem:[#allocation10] sm:$0xff] %v639_v32  ;;  %1150 = vpow2.f32 %v985_v33 }
 0x6f9   :  { %v877_v34 = vpop.xlane.xlu2 %876 }
 0x6fa   :  { %v878_v35 = vsub.f32 %v872_v20, %v877_v34 }
 0x6fc   :  { %v1149_v0 = vpop.eup %1148  ;;  %v879_v57 = vmul.f32 1.442695, %v878_v35 }
 0x6fd   :  { %v1151_v36 = vpop.eup %1150  ;;  %v752_v37 = vsel %vm243_vm1, %v1149_v0, 0.0 }
 0x6fe   :  { %1152 = vpow2.f32 %v879_v57  ;;  %753 = vadd.xlane.f32.xlu1 %v752_v37  ;;  %v987_v38 = vsel %vm243_vm1, %v1151_v36, 0.0 }
 0x6ff   :  { %988 = vadd.xlane.f32.xlu0 %v987_v38 }
 0x704   :  { %v1492_v39 = vpop.eup %1152 }
 0x705   :  { %v881_v40 = vsel %vm243_vm1, %v1492_v39, 0.0 }
 0x706   :  { %882 = vadd.xlane.f32.xlu2 %v881_v40 }
 0x713   :  { %1005 = vrot.lane.b32.xlu0 %v1433_v29, %s1296_s13 }
 0x717   :  { %771 = vrot.lane.b32.xlu1 %v1433_v29, %s1294_s2 }
 0x71e   :  { %899 = vrot.lane.b32.xlu2 %v1433_v29, %s1295_s3 }
 0x771   :  { %v754_v41 = vpop.xlane.xlu1 %753 }
 0x772   :  { %1154 = vrcp.f32 %v754_v41  ;;  %v989_v42 = vpop.xlane.xlu0 %988  ;;  %v766_v56 = vand.u32 2147483648, %v754_v41  ;;  %vm760_vm11 = vweird.f32 %v754_v41  ;;  %v764_v63 = vand.u32 2147483647, %v754_v41 }
 0x773   :  { %1156 = vrcp.f32 %v989_v42  ;;  %v1001_v59 = vand.u32 2147483648, %v989_v42  ;;  %v999_v55 = vand.u32 2147483647, %v989_v42  ;;  %vm995_vm10 = vweird.f32 %v989_v42 }
 0x774   :  { %v767_v5 = vor.u32 1.1754944e-38, %v766_v56  ;;  %vm765_vm15 = vcmp.eq.f32.partialorder %v764_v63, 8.507059e+37 }
 0x775   :  { %v1002_v1 = vor.u32 1.1754944e-38, %v1001_v59  ;;  %vm1000_vm14 = vcmp.eq.f32.partialorder %v999_v55, 8.507059e+37 }
 0x778   :  { %v1155_v43 = vpop.eup %1154 }
 0x779   :  { %v1157_v44 = vpop.eup %1156  ;;  %v756_v45 = vmul.f32 %v1155_v43, %v754_v41  ;;  %v883_v46 = vpop.xlane.xlu2 %882  ;;  %vm761_vm9 = vweird.f32 %v1155_v43 }
 0x77a   :  { %v991_v47 = vmul.f32 %v1157_v44, %v989_v42  ;;  %1158 = vrcp.f32 %v883_v46  ;;  %vm996_vm8 = vweird.f32 %v1157_v44  ;;  %vm762_vm13 = vmor %vm760_vm11, %vm761_vm9  ;;  %v895_v11 = vand.u32 2147483648, %v883_v46 }
 0x77b   :  { %v757_v48 = vsub.f32 1.0, %v756_v45  ;;  %vm997_vm12 = vmor %vm995_vm10, %vm996_vm8  ;;  %vm889_vm3 = vweird.f32 %v883_v46  ;;  %v893_v12 = vand.u32 2147483647, %v883_v46 }
 0x77c   :  { %v992_v49 = vsub.f32 1.0, %v991_v47  ;;  %v896_v19 = vor.u32 1.1754944e-38, %v895_v11 }
 0x77d   :  { %v758_v53 = vmul.f32 %v1155_v43, %v757_v48  ;;  %vm894_vm5 = vcmp.eq.f32.partialorder %v893_v12, 8.507059e+37 }
 0x77e   :  { %v993_v54 = vmul.f32 %v1157_v44, %v992_v49 }
 0x77f   :  { %v759_v51 = vadd.f32 %v1155_v43, %v758_v53 }
 0x780   :  { %v1159_v29 = vpop.eup %1158  ;;  %v994_v58 = vadd.f32 %v1157_v44, %v993_v54 }
 0x781   :  { %v885_v52 = vmul.f32 %v1159_v29, %v883_v46  ;;  %v763_v50 = vsel %vm762_vm13, %v1155_v43, %v759_v51  ;;  %vm890_vm2 = vweird.f32 %v1159_v29  ;;  %v900_v18 = vpop.permute.xlu2 %899 }
 0x782   :  { %v998_v2 = vsel %vm997_vm12, %v1157_v44, %v994_v58  ;;  %v768_v9 = vsel %vm765_vm15, %v767_v5, %v763_v50  ;;  %vm891_vm4 = vmor %vm889_vm3, %vm890_vm2 }
 0x783   :  { %v1003_v3 = vsel %vm1000_vm14, %v1002_v1, %v998_v2  ;;  %v886_v4 = vsub.f32 1.0, %v885_v52  ;;  %v769_v16 = vmul.f32 %v1149_v0, %v768_v9 }
 0x784   :  { %v1004_v6 = vmul.f32 %v1151_v36, %v1003_v3 }
 0x785   :  { %v887_v7 = vmul.f32 %v1159_v29, %v886_v4  ;;  %v1006_v8 = vpop.permute.xlu0 %1005 }
 0x786   :  { %1026 = vmatpush.msrb.mxu0 %v1006_v8 }
 0x787   :  { %v888_v10 = vadd.f32 %v1159_v29, %v887_v7  ;;  %1112 = vmatmul.msk.f32.vlgmr.msrb.gmra.mxu0 %vm243_vm1, %v1004_v6 }
 0x789   :  { %v772_v14 = vpop.permute.xlu1 %771  ;;  %v892_v17 = vsel %vm891_vm4, %v1159_v29, %v888_v10 }
 0x78a   :  { %792 = vmatpush.msrb.mxu1 %v772_v14  ;;  %v897_v20 = vsel %vm894_vm5, %v896_v19, %v892_v17 }
 0x78b   :  { %1103 = vmatmul.msk.f32.vlgmr.msrb.gmra.mxu1 %vm243_vm1, %v769_v16  ;;  %v898_v21 = vmul.f32 %v1492_v39, %v897_v20 }
 0x78c   :  { %920 = vmatpush.msra.mxu1 %v900_v18 }
 0x78e   :  { %1050 = vmatpush.msrb.mxu1 %v1458_v60 }
 0x790   :  { %1051 = vmatpush.msrb.mxu1 %v1460_v61 }
 0x792   :  { %1052 = vmatpush.msrb.mxu1 %v1463_v62 }
 0x793   :  { %1108 = vmatmul.msk.f32.vlgmr.msra.gmra.mxu1 %vm243_vm1, %v898_v21 }
 0x794   :  { %1053 = vmatpush.msrb.mxu1 %v1473_v13 }
 0x804   :  { %v1028_v22 = vpop.f32.mrf.mxu0 }
 0x805   :  { %1113 = vmatmul.msk.f32.vlgmr.msrb.gmra.mxu1 %vm216_vm0, %v1028_v22 }
 0x808   :  { %v794_v23 = vpop.f32.mrf.mxu1 }
 0x809   :  { %1104 = vmatmul.msk.f32.vlgmr.msrb.gmra.mxu2 %vm216_vm0, %v794_v23 }
 0x810   :  { %v922_v25 = vpop.f32.mrf.mxu1 }
 0x811   :  { %1109 = vmatmul.msk.f32.vlgmr.msra.gmra.mxu2 %vm216_vm0, %v922_v25 }
 0x882   :  { %v1055_v28 = vpop.f32.mrf.mxu1 }
 0x88c   :  { %v821_v60 = vpop.f32.mrf.mxu2 }
 0x88d   :  { %v845_v61 = vadd.f32 %v1476_v15, %v821_v60 }
 0x894   :  { %v949_v26 = vpop.f32.mrf.mxu2 }
 0x895   :  { %v952_v27 = vadd.f32 %v949_v26, %v845_v61 }
 0x897   :  { %v1058_v62 = vadd.f32 %v1055_v28, %v952_v27 }
 0x899   :  { %v1059_v13 = vadd.f32 %v1487_v24, %v1058_v62 }
 0x89b   :  { %1060 = vst [vmem:[#allocation10 + $0x8] sm:$0xff] %v1059_v13 }
 0x89c   :  { %1073 = dma.vmem_to_hbm [thread:$0]  %s1066_s16, 256, %s1068_s19, [#allocation4], %s1289_s26, %s1289_s26, %s1290_s27  }
 0x89d   :  { %1286 = dma.done.wait [#allocation4], 256  }
 0x89e   :  { %1287 = vsyncadd [#allocation4], 4294967040 }
 0x89f   :  { %1078 = vsyncpa [#allocation3], 1 }
 0x8a0   :  { %1079 = vsyncpa [#allocation6], 1 }
 0x8a1   :  { %1080 = vsyncpa [#allocation9], 1 }
 0x8a2   :  { %1081 = vsyncpa [#allocation4], 1 }

</bundles_post_ra>
